<compile_context>
chip_gen: v5e
topology: v5e:2x2
jax: 0.10.0
libtpu: 0.0.40
codegen_flags: <defaults>
</compile_context>

<pallas_src>
import jax
import jax.numpy as jnp
from jax.experimental import pallas as pl
from jax.experimental.pallas import tpu as pltpu

T_STEPS = 10


def _round_up(n, m):
    return ((n + m - 1) // m) * m


def _rollout_kernel(x_ref, wA_ref, w2t_ref, wbig_ref, c_ref, out_ref):
    """Full T-step rollout for one batch block; everything VMEM-resident."""
    bb, input_size = x_ref.shape
    hidden = w2t_ref.shape[0]
    hi = hidden + input_size

    x = x_ref[...]                               # (bb, I)
    wA = wA_ref[...]                             # (2I, H+I)
    wcat = wA[:input_size, :]                    # [w1.T | A.T]
    awcat = wA[input_size:, :]                   # A.T @ [w1.T | A.T]
    w2t = w2t_ref[...]                           # (H, H)   = w2.T
    wbig = wbig_ref[...]                         # (H, H+2I) = [ct@wcat | ct]
    c = c_ref[...]                               # packed constant rows

    # Hoisted broadcasts (JAX does not CSE broadcast_in_dim in unrolled loops).
    b1b = jnp.broadcast_to(c[0:1, :hidden], (bb, hidden))
    b2b = jnp.broadcast_to(c[1:2, :hidden], (bb, hidden))
    w3b = jnp.broadcast_to(c[2:3, :hidden], (bb, hidden))
    bBb = jnp.broadcast_to(c[3:4, :input_size], (bb, input_size))   # b3*B.T
    bBwb = jnp.broadcast_to(c[4:5, :], (bb, hi))                    # (b3*B.T)@wcat
    b3b = jnp.broadcast_to(c[5:6, 0:1], (bb, 1))

    # y_t = x_t @ [w1.T | A.T]  (first H lanes: fc1 pre-act, last I: x@A.T).
    y = jnp.dot(x, wcat, preferred_element_type=jnp.float32)        # (bb, H+I)

    xs = [x]
    us = []
    # T is a small static constant -> fully unrolled Python loop.
    for _ in range(T_STEPS):
        # Off-critical-path branch of y_{t+1}: depends only on x_t (ready a
        # full step earlier), so it overlaps with the h1 -> h2 serial chain.
        y_br = jnp.dot(x, awcat, preferred_element_type=jnp.float32) + bBwb

        h1 = jnp.maximum(y[:, :hidden] + b1b, 0.0)
        h2 = jnp.maximum(
            jnp.dot(h1, w2t, preferred_element_type=jnp.float32) + b2b, 0.0)
        z = jnp.dot(h2, wbig, preferred_element_type=jnp.float32)   # (bb, H+2I)

        # x_next = x@A.T + u@B.T  ==  y[:, H:] + h2@(B@w3).T + b3*B.T
        x_next = y[:, hidden:] + z[:, hi:] + bBb
        # y_{t+1} = x_next @ [w1.T | A.T], rebuilt without touching x_next.
        y = y_br + z[:, :hi]
        # u only feeds the output list; VPU/XLU reduce, off the x/y chain.
        u = jnp.sum(h2 * w3b, axis=-1, keepdims=True) + b3b         # (bb, 1)

        xs.append(x_next)
        us.append(u)
        x = x_next

    # Single lane-dense (>=128-lane, unmasked) store of the whole rollout.
    pieces = xs + us
    pad = out_ref.shape[1] - ((T_STEPS + 1) * input_size + T_STEPS)
    if pad > 0:
        pieces.append(jnp.zeros((bb, pad), jnp.float32))
    out_ref[...] = jnp.concatenate(pieces, axis=-1)


def mlp_rollout(x, w1, b1, w2, b2, w3, b3, A, B):
    batch, input_size = x.shape
    hidden = w1.shape[0]
    hi = hidden + input_size
    f32 = jnp.float32
    x = x.astype(f32)

    # ---- wrapper-side weight fusion / pre-transposition (layout plumbing) ---
    wcat = jnp.concatenate([w1.T, A.T], axis=1)                 # (I, H+I)
    awcat = A.T @ wcat                                          # (I, H+I)
    wA = jnp.concatenate([wcat, awcat], axis=0).astype(f32)     # (2I, H+I)
    w2t = w2.T.astype(f32)                                      # (H, H)
    ct = w3.T @ B.T                                             # (H, I) = (B@w3).T
    wbig = jnp.concatenate([ct @ wcat, ct], axis=1).astype(f32) # (H, H+2I)
    bB = b3.reshape(1, 1) * B.T                                 # (1, I)
    bBw = bB @ wcat                                             # (1, H+I)

    # All tiny per-row constants packed into ONE replicated operand.
    cpack = jnp.zeros((8, hi), f32)
    cpack = cpack.at[0, :hidden].set(b1)
    cpack = cpack.at[1, :hidden].set(b2)
    cpack = cpack.at[2, :hidden].set(w3.reshape(-1))
    cpack = cpack.at[3, :input_size].set(bB.reshape(-1))
    cpack = cpack.at[4, :].set(bBw.reshape(-1))
    cpack = cpack.at[5, 0].set(b3.reshape(-1)[0])

    out_cols = (T_STEPS + 1) * input_size + T_STEPS
    out_width = _round_up(out_cols, 128)

    # ---- grid / block selection ---------------------------------------------
    if batch <= 8:
        block_b = batch                      # single tiny full-dim block
    else:
        # >= 2 blocks so the "parallel" axis shards across v7x's two TCs.
        block_b = _round_up(pl.cdiv(batch, 2), 8)
        block_b = min(block_b, 1024)         # amortize ~0.35us/grid-step
        # Keep double-buffered x/out blocks comfortably inside VMEM (v7x: 64MiB).
        row_bytes = 4 * (input_size + out_width)
        vmem_rows = max(8, (16 * 1024 * 1024) // (2 * row_bytes))
        block_b = min(block_b, (vmem_rows // 8) * 8)
    num_blocks = pl.cdiv(batch, block_b)

    def _rep_spec(arr):
        nd = arr.ndim
        return pl.BlockSpec(arr.shape, lambda i, _nd=nd: (0,) * _nd)

    grid_spec = pltpu.PrefetchScalarGridSpec(
        num_scalar_prefetch=0,
        grid=(num_blocks,),
        in_specs=[
            pl.BlockSpec((block_b, input_size), lambda i: (i, 0)),   # x
            _rep_spec(wA), _rep_spec(w2t), _rep_spec(wbig), _rep_spec(cpack),
        ],
        out_specs=pl.BlockSpec((block_b, out_width), lambda i: (i, 0)),
    )

    slab = pl.pallas_call(
        _rollout_kernel,
        out_shape=jax.ShapeDtypeStruct((batch, out_width), f32),
        grid_spec=grid_spec,
        compiler_params=pltpu.CompilerParams(
            dimension_semantics=("parallel",),
            vmem_limit_bytes=32 * 1024 * 1024,
        ),
    )(x, wA, w2t, wbig, cpack)

    # Dense stacked outputs (wrapper-side unpack of the lane-dense slab).
    nx = (T_STEPS + 1) * input_size
    x_out = jnp.moveaxis(
        slab[:, :nx].reshape(batch, T_STEPS + 1, input_size), 1, 0)  # (T+1,b,I)
    u_out = jnp.moveaxis(
        slab[:, nx:nx + T_STEPS].reshape(batch, T_STEPS, 1), 1, 0)   # (T, b, 1)
    return x_out, u_out


def _reference(x, w1, b1, w2, b2, w3, b3, A, B):
    """Pure-JAX reference mirroring the PyTorch forward."""
    x_list = [x]
    u_list = []
    for _ in range(T_STEPS):
        xc = x_list[-1]
        h1 = jnp.maximum(xc @ w1.T + b1, 0.0)
        h2 = jnp.maximum(h1 @ w2.T + b2, 0.0)
        u = h2 @ w3.T + b3
        x_next = (A @ xc.T + B @ u.T).T
        x_list.append(x_next)
        u_list.append(u)
    return jnp.stack(x_list), jnp.stack(u_list)


if __name__ == "__main__":
    batch = 2
    input_size = 4
    hidden_size = 32

    key = jax.random.PRNGKey(0)
    ks = jax.random.split(key, 10)

    x = jax.random.normal(ks[0], (batch, input_size), jnp.float32)
    w1 = jax.random.normal(ks[1], (hidden_size, input_size), jnp.float32) * 0.1
    b1 = jax.random.normal(ks[2], (hidden_size,), jnp.float32) * 0.1
    w2 = jax.random.normal(ks[3], (hidden_size, hidden_size), jnp.float32) * 0.1
    b2 = jax.random.normal(ks[4], (hidden_size,), jnp.float32) * 0.1
    w3 = jax.random.normal(ks[5], (1, hidden_size), jnp.float32) * 0.1
    b3 = jax.random.normal(ks[6], (1,), jnp.float32) * 0.1
    # Keep dynamics stable-ish for the 10-step rollout.
    A = jnp.eye(input_size, dtype=jnp.float32) * 0.9 + \
        jax.random.normal(ks[7], (input_size, input_size), jnp.float32) * 0.01
    B = jax.random.normal(ks[8], (input_size, 1), jnp.float32) * 0.1

    x_out, u_out = mlp_rollout(x, w1, b1, w2, b2, w3, b3, A, B)
    jax.block_until_ready(x_out)
    jax.block_until_ready(u_out)

    x_ref, u_ref = _reference(x, w1, b1, w2, b2, w3, b3, A, B)
    assert x_out.shape == x_ref.shape and u_out.shape == u_ref.shape
    assert jnp.allclose(x_out, x_ref, atol=1e-4, rtol=1e-4), "x mismatch"
    assert jnp.allclose(u_out, u_ref, atol=1e-4, rtol=1e-4), "u mismatch"

    print("KERNEL_OK")
</pallas_src>

<mosaic_0001>
module attributes {stable_mosaic.version = 11 : i64} {
  func.func @_rollout_kernel(%arg0: i32, %arg1: memref<2x4xf32, #tpu.memory_space<vmem>>, %arg2: memref<8x36xf32, #tpu.memory_space<vmem>>, %arg3: memref<32x32xf32, #tpu.memory_space<vmem>>, %arg4: memref<32x40xf32, #tpu.memory_space<vmem>>, %arg5: memref<8x36xf32, #tpu.memory_space<vmem>>, %arg6: memref<2x128xf32, #tpu.memory_space<vmem>>) attributes {dimension_semantics = [#tpu.dimension_semantics<parallel>], iteration_bounds = array<i64: 1>, scalar_prefetch = 0 : i64, scratch_operands = 0 : i64, tpu.core_type = #tpu.core_type<tc>, window_params = [{transform_indices = @transform_0, window_bounds = array<i64: 2, 4>}, {pipeline_mode = #tpu.pipeline_mode<synchronous>, transform_indices = @transform_1, window_bounds = array<i64: 8, 36>}, {pipeline_mode = #tpu.pipeline_mode<synchronous>, transform_indices = @transform_2, window_bounds = array<i64: 32, 32>}, {pipeline_mode = #tpu.pipeline_mode<synchronous>, transform_indices = @transform_3, window_bounds = array<i64: 32, 40>}, {pipeline_mode = #tpu.pipeline_mode<synchronous>, transform_indices = @transform_4, window_bounds = array<i64: 8, 36>}, {transform_indices = @transform_5, window_bounds = array<i64: 2, 128>}]} {
    %c0 = arith.constant 0 : index
    %c0_0 = arith.constant 0 : index
    %0 = vector.load %arg1[%c0, %c0_0] : memref<2x4xf32, #tpu.memory_space<vmem>>, vector<2x4xf32>
    %c0_1 = arith.constant 0 : index
    %c0_2 = arith.constant 0 : index
    %1 = vector.load %arg2[%c0_1, %c0_2] : memref<8x36xf32, #tpu.memory_space<vmem>>, vector<8x36xf32>
    %2 = vector.extract_strided_slice %1 {offsets = [0, 0], sizes = [4, 36], strides = [1, 1]} : vector<8x36xf32> to vector<4x36xf32>
    %3 = vector.extract_strided_slice %1 {offsets = [4, 0], sizes = [4, 36], strides = [1, 1]} : vector<8x36xf32> to vector<4x36xf32>
    %c0_3 = arith.constant 0 : index
    %c0_4 = arith.constant 0 : index
    %4 = vector.load %arg3[%c0_3, %c0_4] : memref<32x32xf32, #tpu.memory_space<vmem>>, vector<32x32xf32>
    %c0_5 = arith.constant 0 : index
    %c0_6 = arith.constant 0 : index
    %5 = vector.load %arg4[%c0_5, %c0_6] : memref<32x40xf32, #tpu.memory_space<vmem>>, vector<32x40xf32>
    %c0_7 = arith.constant 0 : index
    %c0_8 = arith.constant 0 : index
    %6 = vector.load %arg5[%c0_7, %c0_8] : memref<8x36xf32, #tpu.memory_space<vmem>>, vector<8x36xf32>
    %7 = vector.extract_strided_slice %6 {offsets = [0, 0], sizes = [1, 32], strides = [1, 1]} : vector<8x36xf32> to vector<1x32xf32>
    %8 = vector.shape_cast %7 : vector<1x32xf32> to vector<1x32xf32>
    %9 = vector.broadcast %8 : vector<1x32xf32> to vector<2x32xf32>
    %10 = vector.extract_strided_slice %6 {offsets = [1, 0], sizes = [1, 32], strides = [1, 1]} : vector<8x36xf32> to vector<1x32xf32>
    %11 = vector.shape_cast %10 : vector<1x32xf32> to vector<1x32xf32>
    %12 = vector.broadcast %11 : vector<1x32xf32> to vector<2x32xf32>
    %13 = vector.extract_strided_slice %6 {offsets = [2, 0], sizes = [1, 32], strides = [1, 1]} : vector<8x36xf32> to vector<1x32xf32>
    %14 = vector.shape_cast %13 : vector<1x32xf32> to vector<1x32xf32>
    %15 = vector.broadcast %14 : vector<1x32xf32> to vector<2x32xf32>
    %16 = vector.extract_strided_slice %6 {offsets = [3, 0], sizes = [1, 4], strides = [1, 1]} : vector<8x36xf32> to vector<1x4xf32>
    %17 = vector.shape_cast %16 : vector<1x4xf32> to vector<1x4xf32>
    %18 = vector.broadcast %17 : vector<1x4xf32> to vector<2x4xf32>
    %19 = vector.extract_strided_slice %6 {offsets = [4, 0], sizes = [1, 36], strides = [1, 1]} : vector<8x36xf32> to vector<1x36xf32>
    %20 = vector.shape_cast %19 : vector<1x36xf32> to vector<1x36xf32>
    %21 = vector.broadcast %20 : vector<1x36xf32> to vector<2x36xf32>
    %22 = vector.extract_strided_slice %6 {offsets = [5, 0], sizes = [1, 1], strides = [1, 1]} : vector<8x36xf32> to vector<1x1xf32>
    %23 = vector.shape_cast %22 : vector<1x1xf32> to vector<1x1xf32>
    %24 = vector.broadcast %23 : vector<1x1xf32> to vector<2x1xf32>
    %cst = arith.constant dense<0.000000e+00> : vector<2x36xf32>
    %25 = tpu.matmul %0, %2, %cst {dimension_numbers = #tpu.dot_dimension_numbers<[1], [0], [0], [1], [0, 0, 1, 1], [], []>} : vector<2x4xf32>, vector<4x36xf32>, vector<2x36xf32> -> vector<2x36xf32>
    %cst_9 = arith.constant dense<0.000000e+00> : vector<2x36xf32>
    %26 = tpu.matmul %0, %3, %cst_9 {dimension_numbers = #tpu.dot_dimension_numbers<[1], [0], [0], [1], [0, 0, 1, 1], [], []>} : vector<2x4xf32>, vector<4x36xf32>, vector<2x36xf32> -> vector<2x36xf32>
    %27 = arith.addf %26, %21 : vector<2x36xf32>
    %28 = vector.extract_strided_slice %25 {offsets = [0, 0], sizes = [2, 32], strides = [1, 1]} : vector<2x36xf32> to vector<2x32xf32>
    %29 = arith.addf %28, %9 : vector<2x32xf32>
    %cst_10 = arith.constant 0.000000e+00 : f32
    %30 = vector.broadcast %cst_10 : f32 to vector<2x32xf32>
    %31 = arith.maximumf %29, %30 : vector<2x32xf32>
    %cst_11 = arith.constant dense<0.000000e+00> : vector<2x32xf32>
    %32 = tpu.matmul %31, %4, %cst_11 {dimension_numbers = #tpu.dot_dimension_numbers<[1], [0], [0], [1], [0, 0, 1, 1], [], []>} : vector<2x32xf32>, vector<32x32xf32>, vector<2x32xf32> -> vector<2x32xf32>
    %33 = arith.addf %32, %12 : vector<2x32xf32>
    %cst_12 = arith.constant 0.000000e+00 : f32
    %34 = vector.broadcast %cst_12 : f32 to vector<2x32xf32>
    %35 = arith.maximumf %33, %34 : vector<2x32xf32>
    %cst_13 = arith.constant dense<0.000000e+00> : vector<2x40xf32>
    %36 = tpu.matmul %35, %5, %cst_13 {dimension_numbers = #tpu.dot_dimension_numbers<[1], [0], [0], [1], [0, 0, 1, 1], [], []>} : vector<2x32xf32>, vector<32x40xf32>, vector<2x40xf32> -> vector<2x40xf32>
    %37 = vector.extract_strided_slice %25 {offsets = [0, 32], sizes = [2, 4], strides = [1, 1]} : vector<2x36xf32> to vector<2x4xf32>
    %38 = vector.extract_strided_slice %36 {offsets = [0, 36], sizes = [2, 4], strides = [1, 1]} : vector<2x40xf32> to vector<2x4xf32>
    %39 = arith.addf %37, %38 : vector<2x4xf32>
    %40 = arith.addf %39, %18 : vector<2x4xf32>
    %41 = vector.extract_strided_slice %36 {offsets = [0, 0], sizes = [2, 36], strides = [1, 1]} : vector<2x40xf32> to vector<2x36xf32>
    %42 = arith.addf %27, %41 : vector<2x36xf32>
    %43 = arith.mulf %35, %15 : vector<2x32xf32>
    %cst_14 = arith.constant dense<0.000000e+00> : vector<2xf32>
    %44 = vector.multi_reduction <add>, %43, %cst_14 [1] : vector<2x32xf32> to vector<2xf32>
    %45 = vector.shape_cast %44 : vector<2xf32> to vector<2x1xf32>
    %46 = arith.addf %45, %24 : vector<2x1xf32>
    %cst_15 = arith.constant dense<0.000000e+00> : vector<2x36xf32>
    %47 = tpu.matmul %40, %3, %cst_15 {dimension_numbers = #tpu.dot_dimension_numbers<[1], [0], [0], [1], [0, 0, 1, 1], [], []>} : vector<2x4xf32>, vector<4x36xf32>, vector<2x36xf32> -> vector<2x36xf32>
    %48 = arith.addf %47, %21 : vector<2x36xf32>
    %49 = vector.extract_strided_slice %42 {offsets = [0, 0], sizes = [2, 32], strides = [1, 1]} : vector<2x36xf32> to vector<2x32xf32>
    %50 = arith.addf %49, %9 : vector<2x32xf32>
    %cst_16 = arith.constant 0.000000e+00 : f32
    %51 = vector.broadcast %cst_16 : f32 to vector<2x32xf32>
    %52 = arith.maximumf %50, %51 : vector<2x32xf32>
    %cst_17 = arith.constant dense<0.000000e+00> : vector<2x32xf32>
    %53 = tpu.matmul %52, %4, %cst_17 {dimension_numbers = #tpu.dot_dimension_numbers<[1], [0], [0], [1], [0, 0, 1, 1], [], []>} : vector<2x32xf32>, vector<32x32xf32>, vector<2x32xf32> -> vector<2x32xf32>
    %54 = arith.addf %53, %12 : vector<2x32xf32>
    %cst_18 = arith.constant 0.000000e+00 : f32
    %55 = vector.broadcast %cst_18 : f32 to vector<2x32xf32>
    %56 = arith.maximumf %54, %55 : vector<2x32xf32>
    %cst_19 = arith.constant dense<0.000000e+00> : vector<2x40xf32>
    %57 = tpu.matmul %56, %5, %cst_19 {dimension_numbers = #tpu.dot_dimension_numbers<[1], [0], [0], [1], [0, 0, 1, 1], [], []>} : vector<2x32xf32>, vector<32x40xf32>, vector<2x40xf32> -> vector<2x40xf32>
    %58 = vector.extract_strided_slice %42 {offsets = [0, 32], sizes = [2, 4], strides = [1, 1]} : vector<2x36xf32> to vector<2x4xf32>
    %59 = vector.extract_strided_slice %57 {offsets = [0, 36], sizes = [2, 4], strides = [1, 1]} : vector<2x40xf32> to vector<2x4xf32>
    %60 = arith.addf %58, %59 : vector<2x4xf32>
    %61 = arith.addf %60, %18 : vector<2x4xf32>
    %62 = vector.extract_strided_slice %57 {offsets = [0, 0], sizes = [2, 36], strides = [1, 1]} : vector<2x40xf32> to vector<2x36xf32>
    %63 = arith.addf %48, %62 : vector<2x36xf32>
    %64 = arith.mulf %56, %15 : vector<2x32xf32>
    %cst_20 = arith.constant dense<0.000000e+00> : vector<2xf32>
    %65 = vector.multi_reduction <add>, %64, %cst_20 [1] : vector<2x32xf32> to vector<2xf32>
    %66 = vector.shape_cast %65 : vector<2xf32> to vector<2x1xf32>
    %67 = arith.addf %66, %24 : vector<2x1xf32>
    %cst_21 = arith.constant dense<0.000000e+00> : vector<2x36xf32>
    %68 = tpu.matmul %61, %3, %cst_21 {dimension_numbers = #tpu.dot_dimension_numbers<[1], [0], [0], [1], [0, 0, 1, 1], [], []>} : vector<2x4xf32>, vector<4x36xf32>, vector<2x36xf32> -> vector<2x36xf32>
    %69 = arith.addf %68, %21 : vector<2x36xf32>
    %70 = vector.extract_strided_slice %63 {offsets = [0, 0], sizes = [2, 32], strides = [1, 1]} : vector<2x36xf32> to vector<2x32xf32>
    %71 = arith.addf %70, %9 : vector<2x32xf32>
    %cst_22 = arith.constant 0.000000e+00 : f32
    %72 = vector.broadcast %cst_22 : f32 to vector<2x32xf32>
    %73 = arith.maximumf %71, %72 : vector<2x32xf32>
    %cst_23 = arith.constant dense<0.000000e+00> : vector<2x32xf32>
    %74 = tpu.matmul %73, %4, %cst_23 {dimension_numbers = #tpu.dot_dimension_numbers<[1], [0], [0], [1], [0, 0, 1, 1], [], []>} : vector<2x32xf32>, vector<32x32xf32>, vector<2x32xf32> -> vector<2x32xf32>
    %75 = arith.addf %74, %12 : vector<2x32xf32>
    %cst_24 = arith.constant 0.000000e+00 : f32
    %76 = vector.broadcast %cst_24 : f32 to vector<2x32xf32>
    %77 = arith.maximumf %75, %76 : vector<2x32xf32>
    %cst_25 = arith.constant dense<0.000000e+00> : vector<2x40xf32>
    %78 = tpu.matmul %77, %5, %cst_25 {dimension_numbers = #tpu.dot_dimension_numbers<[1], [0], [0], [1], [0, 0, 1, 1], [], []>} : vector<2x32xf32>, vector<32x40xf32>, vector<2x40xf32> -> vector<2x40xf32>
    %79 = vector.extract_strided_slice %63 {offsets = [0, 32], sizes = [2, 4], strides = [1, 1]} : vector<2x36xf32> to vector<2x4xf32>
    %80 = vector.extract_strided_slice %78 {offsets = [0, 36], sizes = [2, 4], strides = [1, 1]} : vector<2x40xf32> to vector<2x4xf32>
    %81 = arith.addf %79, %80 : vector<2x4xf32>
    %82 = arith.addf %81, %18 : vector<2x4xf32>
    %83 = vector.extract_strided_slice %78 {offsets = [0, 0], sizes = [2, 36], strides = [1, 1]} : vector<2x40xf32> to vector<2x36xf32>
    %84 = arith.addf %69, %83 : vector<2x36xf32>
    %85 = arith.mulf %77, %15 : vector<2x32xf32>
    %cst_26 = arith.constant dense<0.000000e+00> : vector<2xf32>
    %86 = vector.multi_reduction <add>, %85, %cst_26 [1] : vector<2x32xf32> to vector<2xf32>
    %87 = vector.shape_cast %86 : vector<2xf32> to vector<2x1xf32>
    %88 = arith.addf %87, %24 : vector<2x1xf32>
    %cst_27 = arith.constant dense<0.000000e+00> : vector<2x36xf32>
    %89 = tpu.matmul %82, %3, %cst_27 {dimension_numbers = #tpu.dot_dimension_numbers<[1], [0], [0], [1], [0, 0, 1, 1], [], []>} : vector<2x4xf32>, vector<4x36xf32>, vector<2x36xf32> -> vector<2x36xf32>
    %90 = arith.addf %89, %21 : vector<2x36xf32>
    %91 = vector.extract_strided_slice %84 {offsets = [0, 0], sizes = [2, 32], strides = [1, 1]} : vector<2x36xf32> to vector<2x32xf32>
    %92 = arith.addf %91, %9 : vector<2x32xf32>
    %cst_28 = arith.constant 0.000000e+00 : f32
    %93 = vector.broadcast %cst_28 : f32 to vector<2x32xf32>
    %94 = arith.maximumf %92, %93 : vector<2x32xf32>
    %cst_29 = arith.constant dense<0.000000e+00> : vector<2x32xf32>
    %95 = tpu.matmul %94, %4, %cst_29 {dimension_numbers = #tpu.dot_dimension_numbers<[1], [0], [0], [1], [0, 0, 1, 1], [], []>} : vector<2x32xf32>, vector<32x32xf32>, vector<2x32xf32> -> vector<2x32xf32>
    %96 = arith.addf %95, %12 : vector<2x32xf32>
    %cst_30 = arith.constant 0.000000e+00 : f32
    %97 = vector.broadcast %cst_30 : f32 to vector<2x32xf32>
    %98 = arith.maximumf %96, %97 : vector<2x32xf32>
    %cst_31 = arith.constant dense<0.000000e+00> : vector<2x40xf32>
    %99 = tpu.matmul %98, %5, %cst_31 {dimension_numbers = #tpu.dot_dimension_numbers<[1], [0], [0], [1], [0, 0, 1, 1], [], []>} : vector<2x32xf32>, vector<32x40xf32>, vector<2x40xf32> -> vector<2x40xf32>
    %100 = vector.extract_strided_slice %84 {offsets = [0, 32], sizes = [2, 4], strides = [1, 1]} : vector<2x36xf32> to vector<2x4xf32>
    %101 = vector.extract_strided_slice %99 {offsets = [0, 36], sizes = [2, 4], strides = [1, 1]} : vector<2x40xf32> to vector<2x4xf32>
    %102 = arith.addf %100, %101 : vector<2x4xf32>
    %103 = arith.addf %102, %18 : vector<2x4xf32>
    %104 = vector.extract_strided_slice %99 {offsets = [0, 0], sizes = [2, 36], strides = [1, 1]} : vector<2x40xf32> to vector<2x36xf32>
    %105 = arith.addf %90, %104 : vector<2x36xf32>
    %106 = arith.mulf %98, %15 : vector<2x32xf32>
    %cst_32 = arith.constant dense<0.000000e+00> : vector<2xf32>
    %107 = vector.multi_reduction <add>, %106, %cst_32 [1] : vector<2x32xf32> to vector<2xf32>
    %108 = vector.shape_cast %107 : vector<2xf32> to vector<2x1xf32>
    %109 = arith.addf %108, %24 : vector<2x1xf32>
    %cst_33 = arith.constant dense<0.000000e+00> : vector<2x36xf32>
    %110 = tpu.matmul %103, %3, %cst_33 {dimension_numbers = #tpu.dot_dimension_numbers<[1], [0], [0], [1], [0, 0, 1, 1], [], []>} : vector<2x4xf32>, vector<4x36xf32>, vector<2x36xf32> -> vector<2x36xf32>
    %111 = arith.addf %110, %21 : vector<2x36xf32>
    %112 = vector.extract_strided_slice %105 {offsets = [0, 0], sizes = [2, 32], strides = [1, 1]} : vector<2x36xf32> to vector<2x32xf32>
    %113 = arith.addf %112, %9 : vector<2x32xf32>
    %cst_34 = arith.constant 0.000000e+00 : f32
    %114 = vector.broadcast %cst_34 : f32 to vector<2x32xf32>
    %115 = arith.maximumf %113, %114 : vector<2x32xf32>
    %cst_35 = arith.constant dense<0.000000e+00> : vector<2x32xf32>
    %116 = tpu.matmul %115, %4, %cst_35 {dimension_numbers = #tpu.dot_dimension_numbers<[1], [0], [0], [1], [0, 0, 1, 1], [], []>} : vector<2x32xf32>, vector<32x32xf32>, vector<2x32xf32> -> vector<2x32xf32>
    %117 = arith.addf %116, %12 : vector<2x32xf32>
    %cst_36 = arith.constant 0.000000e+00 : f32
    %118 = vector.broadcast %cst_36 : f32 to vector<2x32xf32>
    %119 = arith.maximumf %117, %118 : vector<2x32xf32>
    %cst_37 = arith.constant dense<0.000000e+00> : vector<2x40xf32>
    %120 = tpu.matmul %119, %5, %cst_37 {dimension_numbers = #tpu.dot_dimension_numbers<[1], [0], [0], [1], [0, 0, 1, 1], [], []>} : vector<2x32xf32>, vector<32x40xf32>, vector<2x40xf32> -> vector<2x40xf32>
    %121 = vector.extract_strided_slice %105 {offsets = [0, 32], sizes = [2, 4], strides = [1, 1]} : vector<2x36xf32> to vector<2x4xf32>
    %122 = vector.extract_strided_slice %120 {offsets = [0, 36], sizes = [2, 4], strides = [1, 1]} : vector<2x40xf32> to vector<2x4xf32>
    %123 = arith.addf %121, %122 : vector<2x4xf32>
    %124 = arith.addf %123, %18 : vector<2x4xf32>
    %125 = vector.extract_strided_slice %120 {offsets = [0, 0], sizes = [2, 36], strides = [1, 1]} : vector<2x40xf32> to vector<2x36xf32>
    %126 = arith.addf %111, %125 : vector<2x36xf32>
    %127 = arith.mulf %119, %15 : vector<2x32xf32>
    %cst_38 = arith.constant dense<0.000000e+00> : vector<2xf32>
    %128 = vector.multi_reduction <add>, %127, %cst_38 [1] : vector<2x32xf32> to vector<2xf32>
    %129 = vector.shape_cast %128 : vector<2xf32> to vector<2x1xf32>
    %130 = arith.addf %129, %24 : vector<2x1xf32>
    %cst_39 = arith.constant dense<0.000000e+00> : vector<2x36xf32>
    %131 = tpu.matmul %124, %3, %cst_39 {dimension_numbers = #tpu.dot_dimension_numbers<[1], [0], [0], [1], [0, 0, 1, 1], [], []>} : vector<2x4xf32>, vector<4x36xf32>, vector<2x36xf32> -> vector<2x36xf32>
    %132 = arith.addf %131, %21 : vector<2x36xf32>
    %133 = vector.extract_strided_slice %126 {offsets = [0, 0], sizes = [2, 32], strides = [1, 1]} : vector<2x36xf32> to vector<2x32xf32>
    %134 = arith.addf %133, %9 : vector<2x32xf32>
    %cst_40 = arith.constant 0.000000e+00 : f32
    %135 = vector.broadcast %cst_40 : f32 to vector<2x32xf32>
    %136 = arith.maximumf %134, %135 : vector<2x32xf32>
    %cst_41 = arith.constant dense<0.000000e+00> : vector<2x32xf32>
    %137 = tpu.matmul %136, %4, %cst_41 {dimension_numbers = #tpu.dot_dimension_numbers<[1], [0], [0], [1], [0, 0, 1, 1], [], []>} : vector<2x32xf32>, vector<32x32xf32>, vector<2x32xf32> -> vector<2x32xf32>
    %138 = arith.addf %137, %12 : vector<2x32xf32>
    %cst_42 = arith.constant 0.000000e+00 : f32
    %139 = vector.broadcast %cst_42 : f32 to vector<2x32xf32>
    %140 = arith.maximumf %138, %139 : vector<2x32xf32>
    %cst_43 = arith.constant dense<0.000000e+00> : vector<2x40xf32>
    %141 = tpu.matmul %140, %5, %cst_43 {dimension_numbers = #tpu.dot_dimension_numbers<[1], [0], [0], [1], [0, 0, 1, 1], [], []>} : vector<2x32xf32>, vector<32x40xf32>, vector<2x40xf32> -> vector<2x40xf32>
    %142 = vector.extract_strided_slice %126 {offsets = [0, 32], sizes = [2, 4], strides = [1, 1]} : vector<2x36xf32> to vector<2x4xf32>
    %143 = vector.extract_strided_slice %141 {offsets = [0, 36], sizes = [2, 4], strides = [1, 1]} : vector<2x40xf32> to vector<2x4xf32>
    %144 = arith.addf %142, %143 : vector<2x4xf32>
    %145 = arith.addf %144, %18 : vector<2x4xf32>
    %146 = vector.extract_strided_slice %141 {offsets = [0, 0], sizes = [2, 36], strides = [1, 1]} : vector<2x40xf32> to vector<2x36xf32>
    %147 = arith.addf %132, %146 : vector<2x36xf32>
    %148 = arith.mulf %140, %15 : vector<2x32xf32>
    %cst_44 = arith.constant dense<0.000000e+00> : vector<2xf32>
    %149 = vector.multi_reduction <add>, %148, %cst_44 [1] : vector<2x32xf32> to vector<2xf32>
    %150 = vector.shape_cast %149 : vector<2xf32> to vector<2x1xf32>
    %151 = arith.addf %150, %24 : vector<2x1xf32>
    %cst_45 = arith.constant dense<0.000000e+00> : vector<2x36xf32>
    %152 = tpu.matmul %145, %3, %cst_45 {dimension_numbers = #tpu.dot_dimension_numbers<[1], [0], [0], [1], [0, 0, 1, 1], [], []>} : vector<2x4xf32>, vector<4x36xf32>, vector<2x36xf32> -> vector<2x36xf32>
    %153 = arith.addf %152, %21 : vector<2x36xf32>
    %154 = vector.extract_strided_slice %147 {offsets = [0, 0], sizes = [2, 32], strides = [1, 1]} : vector<2x36xf32> to vector<2x32xf32>
    %155 = arith.addf %154, %9 : vector<2x32xf32>
    %cst_46 = arith.constant 0.000000e+00 : f32
    %156 = vector.broadcast %cst_46 : f32 to vector<2x32xf32>
    %157 = arith.maximumf %155, %156 : vector<2x32xf32>
    %cst_47 = arith.constant dense<0.000000e+00> : vector<2x32xf32>
    %158 = tpu.matmul %157, %4, %cst_47 {dimension_numbers = #tpu.dot_dimension_numbers<[1], [0], [0], [1], [0, 0, 1, 1], [], []>} : vector<2x32xf32>, vector<32x32xf32>, vector<2x32xf32> -> vector<2x32xf32>
    %159 = arith.addf %158, %12 : vector<2x32xf32>
    %cst_48 = arith.constant 0.000000e+00 : f32
    %160 = vector.broadcast %cst_48 : f32 to vector<2x32xf32>
    %161 = arith.maximumf %159, %160 : vector<2x32xf32>
    %cst_49 = arith.constant dense<0.000000e+00> : vector<2x40xf32>
    %162 = tpu.matmul %161, %5, %cst_49 {dimension_numbers = #tpu.dot_dimension_numbers<[1], [0], [0], [1], [0, 0, 1, 1], [], []>} : vector<2x32xf32>, vector<32x40xf32>, vector<2x40xf32> -> vector<2x40xf32>
    %163 = vector.extract_strided_slice %147 {offsets = [0, 32], sizes = [2, 4], strides = [1, 1]} : vector<2x36xf32> to vector<2x4xf32>
    %164 = vector.extract_strided_slice %162 {offsets = [0, 36], sizes = [2, 4], strides = [1, 1]} : vector<2x40xf32> to vector<2x4xf32>
    %165 = arith.addf %163, %164 : vector<2x4xf32>
    %166 = arith.addf %165, %18 : vector<2x4xf32>
    %167 = vector.extract_strided_slice %162 {offsets = [0, 0], sizes = [2, 36], strides = [1, 1]} : vector<2x40xf32> to vector<2x36xf32>
    %168 = arith.addf %153, %167 : vector<2x36xf32>
    %169 = arith.mulf %161, %15 : vector<2x32xf32>
    %cst_50 = arith.constant dense<0.000000e+00> : vector<2xf32>
    %170 = vector.multi_reduction <add>, %169, %cst_50 [1] : vector<2x32xf32> to vector<2xf32>
    %171 = vector.shape_cast %170 : vector<2xf32> to vector<2x1xf32>
    %172 = arith.addf %171, %24 : vector<2x1xf32>
    %cst_51 = arith.constant dense<0.000000e+00> : vector<2x36xf32>
    %173 = tpu.matmul %166, %3, %cst_51 {dimension_numbers = #tpu.dot_dimension_numbers<[1], [0], [0], [1], [0, 0, 1, 1], [], []>} : vector<2x4xf32>, vector<4x36xf32>, vector<2x36xf32> -> vector<2x36xf32>
    %174 = arith.addf %173, %21 : vector<2x36xf32>
    %175 = vector.extract_strided_slice %168 {offsets = [0, 0], sizes = [2, 32], strides = [1, 1]} : vector<2x36xf32> to vector<2x32xf32>
    %176 = arith.addf %175, %9 : vector<2x32xf32>
    %cst_52 = arith.constant 0.000000e+00 : f32
    %177 = vector.broadcast %cst_52 : f32 to vector<2x32xf32>
    %178 = arith.maximumf %176, %177 : vector<2x32xf32>
    %cst_53 = arith.constant dense<0.000000e+00> : vector<2x32xf32>
    %179 = tpu.matmul %178, %4, %cst_53 {dimension_numbers = #tpu.dot_dimension_numbers<[1], [0], [0], [1], [0, 0, 1, 1], [], []>} : vector<2x32xf32>, vector<32x32xf32>, vector<2x32xf32> -> vector<2x32xf32>
    %180 = arith.addf %179, %12 : vector<2x32xf32>
    %cst_54 = arith.constant 0.000000e+00 : f32
    %181 = vector.broadcast %cst_54 : f32 to vector<2x32xf32>
    %182 = arith.maximumf %180, %181 : vector<2x32xf32>
    %cst_55 = arith.constant dense<0.000000e+00> : vector<2x40xf32>
    %183 = tpu.matmul %182, %5, %cst_55 {dimension_numbers = #tpu.dot_dimension_numbers<[1], [0], [0], [1], [0, 0, 1, 1], [], []>} : vector<2x32xf32>, vector<32x40xf32>, vector<2x40xf32> -> vector<2x40xf32>
    %184 = vector.extract_strided_slice %168 {offsets = [0, 32], sizes = [2, 4], strides = [1, 1]} : vector<2x36xf32> to vector<2x4xf32>
    %185 = vector.extract_strided_slice %183 {offsets = [0, 36], sizes = [2, 4], strides = [1, 1]} : vector<2x40xf32> to vector<2x4xf32>
    %186 = arith.addf %184, %185 : vector<2x4xf32>
    %187 = arith.addf %186, %18 : vector<2x4xf32>
    %188 = vector.extract_strided_slice %183 {offsets = [0, 0], sizes = [2, 36], strides = [1, 1]} : vector<2x40xf32> to vector<2x36xf32>
    %189 = arith.addf %174, %188 : vector<2x36xf32>
    %190 = arith.mulf %182, %15 : vector<2x32xf32>
    %cst_56 = arith.constant dense<0.000000e+00> : vector<2xf32>
    %191 = vector.multi_reduction <add>, %190, %cst_56 [1] : vector<2x32xf32> to vector<2xf32>
    %192 = vector.shape_cast %191 : vector<2xf32> to vector<2x1xf32>
    %193 = arith.addf %192, %24 : vector<2x1xf32>
    %cst_57 = arith.constant dense<0.000000e+00> : vector<2x36xf32>
    %194 = tpu.matmul %187, %3, %cst_57 {dimension_numbers = #tpu.dot_dimension_numbers<[1], [0], [0], [1], [0, 0, 1, 1], [], []>} : vector<2x4xf32>, vector<4x36xf32>, vector<2x36xf32> -> vector<2x36xf32>
    %195 = arith.addf %194, %21 : vector<2x36xf32>
    %196 = vector.extract_strided_slice %189 {offsets = [0, 0], sizes = [2, 32], strides = [1, 1]} : vector<2x36xf32> to vector<2x32xf32>
    %197 = arith.addf %196, %9 : vector<2x32xf32>
    %cst_58 = arith.constant 0.000000e+00 : f32
    %198 = vector.broadcast %cst_58 : f32 to vector<2x32xf32>
    %199 = arith.maximumf %197, %198 : vector<2x32xf32>
    %cst_59 = arith.constant dense<0.000000e+00> : vector<2x32xf32>
    %200 = tpu.matmul %199, %4, %cst_59 {dimension_numbers = #tpu.dot_dimension_numbers<[1], [0], [0], [1], [0, 0, 1, 1], [], []>} : vector<2x32xf32>, vector<32x32xf32>, vector<2x32xf32> -> vector<2x32xf32>
    %201 = arith.addf %200, %12 : vector<2x32xf32>
    %cst_60 = arith.constant 0.000000e+00 : f32
    %202 = vector.broadcast %cst_60 : f32 to vector<2x32xf32>
    %203 = arith.maximumf %201, %202 : vector<2x32xf32>
    %cst_61 = arith.constant dense<0.000000e+00> : vector<2x40xf32>
    %204 = tpu.matmul %203, %5, %cst_61 {dimension_numbers = #tpu.dot_dimension_numbers<[1], [0], [0], [1], [0, 0, 1, 1], [], []>} : vector<2x32xf32>, vector<32x40xf32>, vector<2x40xf32> -> vector<2x40xf32>
    %205 = vector.extract_strided_slice %189 {offsets = [0, 32], sizes = [2, 4], strides = [1, 1]} : vector<2x36xf32> to vector<2x4xf32>
    %206 = vector.extract_strided_slice %204 {offsets = [0, 36], sizes = [2, 4], strides = [1, 1]} : vector<2x40xf32> to vector<2x4xf32>
    %207 = arith.addf %205, %206 : vector<2x4xf32>
    %208 = arith.addf %207, %18 : vector<2x4xf32>
    %209 = vector.extract_strided_slice %204 {offsets = [0, 0], sizes = [2, 36], strides = [1, 1]} : vector<2x40xf32> to vector<2x36xf32>
    %210 = arith.addf %195, %209 : vector<2x36xf32>
    %211 = arith.mulf %203, %15 : vector<2x32xf32>
    %cst_62 = arith.constant dense<0.000000e+00> : vector<2xf32>
    %212 = vector.multi_reduction <add>, %211, %cst_62 [1] : vector<2x32xf32> to vector<2xf32>
    %213 = vector.shape_cast %212 : vector<2xf32> to vector<2x1xf32>
    %214 = arith.addf %213, %24 : vector<2x1xf32>
    %215 = vector.extract_strided_slice %210 {offsets = [0, 0], sizes = [2, 32], strides = [1, 1]} : vector<2x36xf32> to vector<2x32xf32>
    %216 = arith.addf %215, %9 : vector<2x32xf32>
    %cst_63 = arith.constant 0.000000e+00 : f32
    %217 = vector.broadcast %cst_63 : f32 to vector<2x32xf32>
    %218 = arith.maximumf %216, %217 : vector<2x32xf32>
    %cst_64 = arith.constant dense<0.000000e+00> : vector<2x32xf32>
    %219 = tpu.matmul %218, %4, %cst_64 {dimension_numbers = #tpu.dot_dimension_numbers<[1], [0], [0], [1], [0, 0, 1, 1], [], []>} : vector<2x32xf32>, vector<32x32xf32>, vector<2x32xf32> -> vector<2x32xf32>
    %220 = arith.addf %219, %12 : vector<2x32xf32>
    %cst_65 = arith.constant 0.000000e+00 : f32
    %221 = vector.broadcast %cst_65 : f32 to vector<2x32xf32>
    %222 = arith.maximumf %220, %221 : vector<2x32xf32>
    %cst_66 = arith.constant dense<0.000000e+00> : vector<2x40xf32>
    %223 = tpu.matmul %222, %5, %cst_66 {dimension_numbers = #tpu.dot_dimension_numbers<[1], [0], [0], [1], [0, 0, 1, 1], [], []>} : vector<2x32xf32>, vector<32x40xf32>, vector<2x40xf32> -> vector<2x40xf32>
    %224 = vector.extract_strided_slice %210 {offsets = [0, 32], sizes = [2, 4], strides = [1, 1]} : vector<2x36xf32> to vector<2x4xf32>
    %225 = vector.extract_strided_slice %223 {offsets = [0, 36], sizes = [2, 4], strides = [1, 1]} : vector<2x40xf32> to vector<2x4xf32>
    %226 = arith.addf %224, %225 : vector<2x4xf32>
    %227 = arith.addf %226, %18 : vector<2x4xf32>
    %228 = arith.mulf %222, %15 : vector<2x32xf32>
    %cst_67 = arith.constant dense<0.000000e+00> : vector<2xf32>
    %229 = vector.multi_reduction <add>, %228, %cst_67 [1] : vector<2x32xf32> to vector<2xf32>
    %230 = vector.shape_cast %229 : vector<2xf32> to vector<2x1xf32>
    %231 = arith.addf %230, %24 : vector<2x1xf32>
    %cst_68 = arith.constant 0.000000e+00 : f32
    %232 = vector.broadcast %cst_68 : f32 to vector<2x74xf32>
    %233 = tpu.concatenate %0, %40, %61, %82, %103, %124, %145, %166, %187, %208, %227, %46, %67, %88, %109, %130 in 1 : vector<2x4xf32>, vector<2x4xf32>, vector<2x4xf32>, vector<2x4xf32>, vector<2x4xf32>, vector<2x4xf32>, vector<2x4xf32>, vector<2x4xf32>, vector<2x4xf32>, vector<2x4xf32>, vector<2x4xf32>, vector<2x1xf32>, vector<2x1xf32>, vector<2x1xf32>, vector<2x1xf32>, vector<2x1xf32> -> vector<2x49xf32>
    %234 = tpu.concatenate %151, %172, %193, %214, %231, %232 in 1 : vector<2x1xf32>, vector<2x1xf32>, vector<2x1xf32>, vector<2x1xf32>, vector<2x1xf32>, vector<2x74xf32> -> vector<2x79xf32>
    %235 = tpu.concatenate %233, %234 in 1 : vector<2x49xf32>, vector<2x79xf32> -> vector<2x128xf32>
    %c0_69 = arith.constant 0 : index
    %c0_70 = arith.constant 0 : index
    %236 = vector.load %arg6[%c0_69, %c0_70] : memref<2x128xf32, #tpu.memory_space<vmem>>, vector<2x128xf32>
    tpu.vector_store %arg6[%c0_69, %c0_70], %235 {strides = array<i32>} : memref<2x128xf32, #tpu.memory_space<vmem>>, vector<2x128xf32>,
    return
  }
  func.func @transform_0(%arg0: i32) -> (i32, i32) {
    %c0_i32 = arith.constant 0 : i32
    %c0_i32_0 = arith.constant 0 : i32
    return %arg0, %c0_i32 : i32, i32
  }
  func.func @transform_1(%arg0: i32) -> (i32, i32) {
    %c0_i32 = arith.constant 0 : i32
    %c0_i32_0 = arith.constant 0 : i32
    %c0_i32_1 = arith.constant 0 : i32
    return %c0_i32, %c0_i32_0 : i32, i32
  }
  func.func @transform_2(%arg0: i32) -> (i32, i32) {
    %c0_i32 = arith.constant 0 : i32
    %c0_i32_0 = arith.constant 0 : i32
    %c0_i32_1 = arith.constant 0 : i32
    return %c0_i32, %c0_i32_0 : i32, i32
  }
  func.func @transform_3(%arg0: i32) -> (i32, i32) {
    %c0_i32 = arith.constant 0 : i32
    %c0_i32_0 = arith.constant 0 : i32
    %c0_i32_1 = arith.constant 0 : i32
    return %c0_i32, %c0_i32_0 : i32, i32
  }
  func.func @transform_4(%arg0: i32) -> (i32, i32) {
    %c0_i32 = arith.constant 0 : i32
    %c0_i32_0 = arith.constant 0 : i32
    %c0_i32_1 = arith.constant 0 : i32
    return %c0_i32, %c0_i32_0 : i32, i32
  }
  func.func @transform_5(%arg0: i32) -> (i32, i32) {
    %c0_i32 = arith.constant 0 : i32
    %c0_i32_0 = arith.constant 0 : i32
    return %arg0, %c0_i32 : i32, i32
  }
}

</mosaic_0001>

<bundles_post_ra>
// kernel: tpu_custom_call.1
= control target key start
LH: loop header
LB: loop body
LE: loop exit
PB: predicated region body
PF: predicated region fallthrough
CT: control target
= control target key end

     0   :  { %10 = vsyncpa [#allocation3], 0  ;;  %s1751_s0 = inlined_call_operand.hbm [shape: f32[2,4], index: 0, kind: input, shape index: {}]   ;;  %s1752_s1 = inlined_call_operand.hbm [shape: f32[8,36], index: 1, kind: input, shape index: {}]   ;;  %s1753_s2 = inlined_call_operand.hbm [shape: f32[32,32], index: 2, kind: input, shape index: {}]   ;;  %s1754_s3 = inlined_call_operand.hbm [shape: f32[32,40], index: 3, kind: input, shape index: {}]   ;;  %s1755_s4 = inlined_call_operand.hbm [shape: f32[8,36], index: 4, kind: input, shape index: {}]   ;;  %s1756_s5 = inlined_call_operand.hbm [shape: f32[2,128], index: 5, kind: output, shape index: {}]  }
   0x1   :  { %11 = vsyncpa [#allocation6], 0 }
   0x2   :  { %12 = vsyncpa [#allocation9], 0  ;;  %s30_s20 = sshll.u32 %s1752_s1, 4  ;;  %s31_s20 = int_to_ptr.hbm [resolvable:$true] %s30_s20 }
   0x3   :  { %13 = vsyncpa [#allocation4], 0  ;;  %s1323_s21 = smov [#allocation5]   ;;  %s53_s25 = sshll.u32 %s1754_s3, 4  ;;  %s54_s25 = int_to_ptr.hbm [resolvable:$true] %s53_s25 }
   0x4   :  { %s32_s22 = sshll.u32 %s1323_s21, 4  ;;  %s1324_s26 = smov [#allocation8]   ;;  %s33_s22 = int_to_ptr.vmem [resolvable:$true] %s32_s22 }
   0x5   :  { %35 = dma.hbm_to_vmem [thread:$0]  %s31_s20, 128, %s33_s22, [#allocation6]  }
   0x6   :  { %s55_s27 = sshll.u32 %s1324_s26, 4  ;;  %s19_s30 = sshll.u32 %s1751_s0, 4  ;;  %s56_s27 = int_to_ptr.vmem [resolvable:$true] %s55_s27  ;;  %s20_s30 = int_to_ptr.hbm [resolvable:$true] %s19_s30 }
   0x7   :  { %s1325_s1 = smov 128   ;;  %s1326_s6 = smov 8  }
   0x8   :  { %61 = dma.hbm_to_vmem [thread:$0]  %s54_s25, 512, %s56_s27, [#allocation9], %s1325_s1, %s1325_s1, %s1326_s6  }
   0x9   :  { %s40_s9 = sshll.u32 %s1753_s2, 4  ;;  %s1327_s10 = smov [#allocation2]   ;;  %s41_s9 = int_to_ptr.hbm [resolvable:$true] %s40_s9 }
   0xa   :  { %s21_s11 = sshll.u32 %s1327_s10, 4  ;;  %s1328_s3 = smov [#allocation7]   ;;  %s22_s11 = int_to_ptr.vmem [resolvable:$true] %s21_s11 }
   0xb   :  { %24 = dma.hbm_to_vmem [thread:$0]  %s20_s30, 32, %s22_s11, [#allocation3]  }
   0xc   :  { %s42_s12 = sshll.u32 %s1328_s3, 4  ;;  %s67_s0 = sshll.u32 %s1755_s4, 4  ;;  %s43_s12 = int_to_ptr.vmem [resolvable:$true] %s42_s12  ;;  %s68_s0 = int_to_ptr.hbm [resolvable:$true] %s67_s0 }
   0xd   :  { %48 = dma.hbm_to_vmem [thread:$0]  %s41_s9, 512, %s43_s12, [#allocation6], %s1325_s1, %s1325_s1, %s1326_s6  }
   0xe   :  { %s1329_s15 = smov [#allocation10]  }
   0xf   :  { %s69_s16 = sshll.u32 %s1329_s15, 4  ;;  %s70_s16 = int_to_ptr.vmem [resolvable:$true] %s69_s16 }
  0x10   :  { %72 = dma.hbm_to_vmem [thread:$0]  %s68_s0, 128, %s70_s16, [#allocation9]  }
  0x11   :  { %1315 = dma.done.wait [#allocation3], 32  }
  0x12   :  { %1316 = vsyncadd [#allocation3], 4294967264 }
  0x13   :  { %1317 = dma.done.wait [#allocation6], 640  }
  0x14   :  { %1318 = vsyncadd [#allocation6], 4294966656 }
  0x15   :  { %1319 = dma.done.wait [#allocation9], 640  }
  0x16   :  { %1320 = vsyncadd [#allocation9], 4294966656  ;;  %vm114_vm0 = vcmask 1043456   ;;  %vm110_vm1 = vcmask 31744   ;;  %v94_v0 = vld [vmem:[#allocation5] sm:$0xff]  ;;  %v1415_v4 = vld [vmem:[#allocation7 + $0x10] sm:$0xff] }
  0x17   :  { %v1397_v1 = vld [vmem:[#allocation2] sm:$0x3]  ;;  %v1399_v2 = vld [vmem:[#allocation7 + $0x18] sm:$0xff]  ;;  %1104 = vmatpush.msk.msra.mxu0 %vm114_vm0, %v94_v0  ;;  %v1402_v3 = vrot.slane %v94_v0, 4  ;;  %v1419_v5 = vld [vmem:[#allocation7 + $0x8] sm:$0xff]  ;;  %vm163_vm2 = vcmask 261120  }
  0x18   :  { %179 = vmatpush.msra.mxu2 %v1399_v2  ;;  %1105 = vmatmul.msk.f32.vlgmr.msra.gmra.mxu0 %vm110_vm1, %v1397_v1  ;;  %v1424_v6 = vld [vmem:[#allocation7] sm:$0xff]  ;;  %v1429_v7 = vld [vmem:[#allocation8 + $0x18] sm:$0xff]  ;;  %v1442_v13 = vld [vmem:[#allocation8 + $0x10] sm:$0xff]  ;;  %s1330_s2 = smov 124   ;;  %s1331_s4 = smov 32   ;;  %vm223_vm3 = vcmask 254976  }
  0x19   :  { %1106 = vmatpush.msk.msra.mxu1 %vm114_vm0, %v1402_v3  ;;  %1110 = vmatpush.msk.msrb.mxu0 %vm114_vm0, %v1402_v3  ;;  %v1435_v8 = vld [vmem:[#allocation10] sm:$0xff]  ;;  %v1446_v14 = vld [vmem:[#allocation8 + $0x8] sm:$0xff]  ;;  %s1332_s17 = smov 96   ;;  %s1333_s18 = smov 112   ;;  %vm1026_vm4 = vcmask 64512   ;;  %vm1028_vm5 = vcmask 97280  }
  0x1a   :  { %1107 = vmatmul.msk.f32.vlgmr.msra.gmra.mxu1 %vm110_vm1, %v1397_v1  ;;  %180 = vmatpush.msra.mxu2 %v1415_v4  ;;  %v1438_v9 = vperm.slane %v1435_v8, 0  ;;  %v1451_v15 = vld [vmem:[#allocation8] sm:$0xff]  ;;  %v1462_v16 = vperm.slane %v1435_v8, 1  ;;  %v1476_v20 = vperm.slane %v1435_v8, 4  ;;  %v107_v27 = vperm.slane %v1435_v8, 3  ;;  %s1334_s19 = smov 120  }
  0x1b   :  { %356 = vmatpush.msra.mxu0 %v1399_v2  ;;  %270 = vmatpush.msrb.mxu1 %v1399_v2  ;;  %s1335_s20 = smov 104   ;;  %s1336_s21 = smov 108   ;;  %vm1030_vm6 = vcmask 130048   ;;  %vm1032_vm7 = vcmask 162816   ;;  %vm1034_vm8 = vcmask 195584   ;;  %vm1036_vm9 = vcmask 228352  }
  0x1c   :  { %181 = vmatpush.msra.mxu2 %v1419_v5  ;;  %203 = vmatpush.msra.mxu3 %v1429_v7  ;;  %s1337_s22 = smov 116   ;;  %s1338_s23 = smov 45   ;;  %vm1039_vm10 = vcmask 293888   ;;  %vm1041_vm11 = vcmask 326656   ;;  %vm1069_vm12 = vcmask 7168   ;;  %vm1071_vm13 = vcmask 15360  }
  0x1d   :  { %271 = vmatpush.msrb.mxu1 %v1415_v4  ;;  %357 = vmatpush.msra.mxu0 %v1415_v4  ;;  %s1339_s24 = smov 48   ;;  %s1340_s25 = smov 100   ;;  %vm1073_vm14 = vcmask 23552   ;;  %vm1076_vm15 = vcmask 39936  }
  0x1e   :  { %182 = vmatpush.msra.mxu2 %v1424_v6  ;;  %204 = vmatpush.msra.mxu3 %v1442_v13  ;;  %s1341_s26 = smov 44   ;;  %s1342_s27 = smov 47  }
  0x1f   :  { %272 = vmatpush.msrb.mxu1 %v1419_v5  ;;  %358 = vmatpush.msra.mxu0 %v1419_v5  ;;  %s1343_s28 = smov 46   ;;  %s1344_s29 = smov 1  }
  0x20   :  { %294 = vmatpush.msrb.mxu2 %v1429_v7  ;;  %205 = vmatpush.msra.mxu3 %v1446_v14  ;;  %s1345_s30 = smov 4   ;;  %s1346_s1 = smov 3  }
  0x21   :  { %273 = vmatpush.msrb.mxu1 %v1424_v6  ;;  %359 = vmatpush.msra.mxu0 %v1424_v6  ;;  %s1347_s7 = smov 2   ;;  %s1349_s8 = smov [#allocation11]  }
  0x22   :  { %295 = vmatpush.msrb.mxu2 %v1442_v13  ;;  %206 = vmatpush.msra.mxu3 %v1451_v15  ;;  %s1090_s9 = sshll.u32 %s1349_s8, 4  ;;  %s1092_s3 = sshll.u32 %s1756_s5, 4  ;;  %s1091_s9 = int_to_ptr.vmem [resolvable:$true] %s1090_s9  ;;  %s1093_s3 = int_to_ptr.hbm [resolvable:$true] %s1092_s3 }
  0x23   :  { %380 = vmatpush.msra.mxu1 %v1429_v7 }
  0x24   :  { %296 = vmatpush.msrb.mxu2 %v1446_v14  ;;  %1114 = vmatpush.msk.msrb.mxu3 %vm114_vm0, %v1402_v3 }
  0x25   :  { %381 = vmatpush.msra.mxu1 %v1442_v13 }
  0x26   :  { %297 = vmatpush.msrb.mxu2 %v1451_v15 }
  0x27   :  { %382 = vmatpush.msra.mxu1 %v1446_v14 }
  0x29   :  { %383 = vmatpush.msra.mxu1 %v1451_v15 }
  0x95   :  { %v135_v10 = vpop.f32.mrf.mxu0 }
  0x96   :  { %v161_v11 = vadd.f32 %v135_v10, %v1438_v9 }
  0x97   :  { %v158_v21 = vpop.f32.mrf.mxu1 }
  0x98   :  { %v162_v12 = vmax.f32 %v161_v11, 0.0  ;;  %v159_v22 = vadd.f32 %v158_v21, %v1476_v20 }
  0x9a   :  { %1108 = vmatmul.msk.f32.vlgmr.msra.gmra.mxu2 %vm163_vm2, %v162_v12 }
  0x9b   :  { %1118 = vmatpush.msk.msra.mxu2 %vm114_vm0, %v1402_v3 }
 0x11d   :  { %v184_v17 = vpop.f32.mrf.mxu2 }
 0x11e   :  { %v1465_v18 = vadd.f32 %v184_v17, %v1462_v16 }
 0x120   :  { %v187_v19 = vmax.f32 %v1465_v18, 0.0 }
 0x122   :  { %1109 = vmatmul.msk.f32.vlgmr.msra.gmra.mxu3 %vm163_vm2, %v187_v19 }
 0x123   :  { %442 = vmatpush.msra.mxu3 %v1399_v2 }
 0x125   :  { %443 = vmatpush.msra.mxu3 %v1415_v4 }
 0x127   :  { %444 = vmatpush.msra.mxu3 %v1419_v5 }
 0x129   :  { %445 = vmatpush.msra.mxu3 %v1424_v6 }
 0x1a5   :  { %v208_v23 = vpop.f32.mrf.mxu3 }
 0x1a6   :  { %v221_v24 = vadd.f32 %v208_v23, %v159_v22  ;;  %212 = vrot.lane.b32.xlu0 %v208_v23, %s1330_s2 }
 0x1a8   :  { %v253_v25 = vadd.f32 %v221_v24, %v1438_v9 }
 0x1aa   :  { %v254_v26 = vmax.f32 %v253_v25, 0.0 }
 0x1ac   :  { %1112 = vmatmul.msk.f32.vlgmr.msrb.gmra.mxu1 %vm163_vm2, %v254_v26 }
 0x1ad   :  { %1122 = vmatpush.msk.msrb.mxu1 %vm114_vm0, %v1402_v3 }
 0x1ae   :  { %217 = vrot.lane.b32.xlu0 %v107_v27, %s1331_s4 }
 0x218   :  { %v213_v28 = vpop.permute.xlu0 %212 }
 0x219   :  { %v215_v29 = vadd.f32 %v213_v28, %v135_v10 }
 0x220   :  { %v1485_v30 = vpop.permute.xlu0 %217 }
 0x221   :  { %v1488_v31 = vadd.f32 %v1485_v30, %v215_v29 }
 0x223   :  { %229 = vrot.lane.b32.xlu1 %v1488_v31, %s1332_s17 }
 0x229   :  { %v275_v32 = vpop.f32.mrf.mxu1 }
 0x22a   :  { %v1493_v33 = vadd.f32 %v275_v32, %v1462_v16 }
 0x22c   :  { %v278_v34 = vmax.f32 %v1493_v33, 0.0 }
 0x22e   :  { %1113 = vmatmul.msk.f32.vlgmr.msrb.gmra.mxu2 %vm163_vm2, %v278_v34 }
 0x22f   :  { %528 = vmatpush.msrb.mxu2 %v1399_v2 }
 0x231   :  { %529 = vmatpush.msrb.mxu2 %v1415_v4 }
 0x233   :  { %530 = vmatpush.msrb.mxu2 %v1419_v5 }
 0x235   :  { %531 = vmatpush.msrb.mxu2 %v1424_v6 }
 0x295   :  { %v230_v35 = vpop.permute.xlu1 %229 }
 0x296   :  { %1111 = vmatmul.msk.f32.vlgmr.msrb.gmra.mxu0 %vm110_vm1, %v230_v35 }
 0x297   :  { %466 = vmatpush.msrb.mxu0 %v1429_v7 }
 0x299   :  { %467 = vmatpush.msrb.mxu0 %v1442_v13 }
 0x29b   :  { %468 = vmatpush.msrb.mxu0 %v1446_v14 }
 0x29d   :  { %469 = vmatpush.msrb.mxu0 %v1451_v15 }
 0x2b1   :  { %v299_v36 = vpop.f32.mrf.mxu2 }
 0x2b2   :  { %303 = vrot.lane.b32.xlu1 %v299_v36, %s1330_s2 }
 0x313   :  { %v250_v37 = vpop.f32.mrf.mxu0 }
 0x314   :  { %v251_v38 = vadd.f32 %v250_v37, %v1476_v20 }
 0x316   :  { %v308_v39 = vadd.f32 %v299_v36, %v251_v38 }
 0x318   :  { %v339_v40 = vadd.f32 %v308_v39, %v1438_v9 }
 0x31a   :  { %v340_v41 = vmax.f32 %v339_v40, 0.0 }
 0x31c   :  { %1116 = vmatmul.msk.f32.vlgmr.msra.gmra.mxu0 %vm163_vm2, %v340_v41 }
 0x31d   :  { %1126 = vmatpush.msk.msra.mxu0 %vm114_vm0, %v1402_v3 }
 0x324   :  { %v304_v42 = vpop.permute.xlu1 %303 }
 0x325   :  { %v306_v43 = vadd.f32 %v304_v42, %v221_v24 }
 0x327   :  { %v1515_v44 = vadd.f32 %v306_v43, %v1485_v30 }
 0x329   :  { %315 = vrot.lane.b32.xlu2 %v1515_v44, %s1332_s17 }
 0x383   :  { %v316_v45 = vpop.permute.xlu2 %315 }
 0x384   :  { %1115 = vmatmul.msk.f32.vlgmr.msrb.gmra.mxu3 %vm110_vm1, %v316_v45 }
 0x385   :  { %552 = vmatpush.msrb.mxu3 %v1429_v7 }
 0x387   :  { %553 = vmatpush.msrb.mxu3 %v1442_v13 }
 0x389   :  { %554 = vmatpush.msrb.mxu3 %v1446_v14 }
 0x38b   :  { %555 = vmatpush.msrb.mxu3 %v1451_v15 }
 0x399   :  { %v361_v46 = vpop.f32.mrf.mxu0 }
 0x39a   :  { %v1525_v47 = vadd.f32 %v361_v46, %v1462_v16 }
 0x39c   :  { %v364_v48 = vmax.f32 %v1525_v47, 0.0 }
 0x39e   :  { %1117 = vmatmul.msk.f32.vlgmr.msra.gmra.mxu1 %vm163_vm2, %v364_v48 }
 0x39f   :  { %614 = vmatpush.msra.mxu1 %v1399_v2 }
 0x3a1   :  { %615 = vmatpush.msra.mxu1 %v1415_v4 }
 0x3a3   :  { %616 = vmatpush.msra.mxu1 %v1419_v5 }
 0x3a5   :  { %617 = vmatpush.msra.mxu1 %v1424_v6 }
 0x407   :  { %v336_v49 = vpop.f32.mrf.mxu3 }
 0x408   :  { %v337_v50 = vadd.f32 %v336_v49, %v1476_v20 }
 0x41b   :  { %v385_v51 = vpop.f32.mrf.mxu1 }
 0x41c   :  { %v394_v52 = vadd.f32 %v385_v51, %v337_v50  ;;  %389 = vrot.lane.b32.xlu2 %v385_v51, %s1330_s2 }
 0x41e   :  { %v425_v53 = vadd.f32 %v394_v52, %v1438_v9 }
 0x420   :  { %v426_v54 = vmax.f32 %v425_v53, 0.0 }
 0x422   :  { %1120 = vmatmul.msk.f32.vlgmr.msra.gmra.mxu3 %vm163_vm2, %v426_v54 }
 0x423   :  { %1130 = vmatpush.msk.msra.mxu3 %vm114_vm0, %v1402_v3 }
 0x476   :  { %v390_v55 = vpop.permute.xlu2 %389 }
 0x477   :  { %v392_v56 = vadd.f32 %v390_v55, %v308_v39 }
 0x479   :  { %v1542_v57 = vadd.f32 %v392_v56, %v1485_v30 }
 0x47b   :  { %401 = vrot.lane.b32.xlu0 %v1542_v57, %s1332_s17 }
 0x4a5   :  { %v447_v58 = vpop.f32.mrf.mxu3 }
 0x4a6   :  { %v1547_v59 = vadd.f32 %v447_v58, %v1462_v16 }
 0x4a8   :  { %v450_v60 = vmax.f32 %v1547_v59, 0.0 }
 0x4aa   :  { %1121 = vmatmul.msk.f32.vlgmr.msrb.gmra.mxu0 %vm163_vm2, %v450_v60 }
 0x4ab   :  { %700 = vmatpush.msrb.mxu0 %v1399_v2 }
 0x4ad   :  { %701 = vmatpush.msrb.mxu0 %v1415_v4 }
 0x4af   :  { %702 = vmatpush.msrb.mxu0 %v1419_v5 }
 0x4b1   :  { %703 = vmatpush.msrb.mxu0 %v1424_v6 }
 0x4ed   :  { %v402_v61 = vpop.permute.xlu0 %401 }
 0x4ee   :  { %1119 = vmatmul.msk.f32.vlgmr.msra.gmra.mxu2 %vm110_vm1, %v402_v61 }
 0x4ef   :  { %638 = vmatpush.msra.mxu2 %v1429_v7 }
 0x4f1   :  { %639 = vmatpush.msra.mxu2 %v1442_v13 }
 0x4f3   :  { %640 = vmatpush.msra.mxu2 %v1446_v14 }
 0x4f5   :  { %641 = vmatpush.msra.mxu2 %v1451_v15 }
 0x527   :  { %v471_v62 = vpop.f32.mrf.mxu0 }
 0x528   :  { %475 = vrot.lane.b32.xlu1 %v471_v62, %s1330_s2 }
 0x571   :  { %v422_v63 = vpop.f32.mrf.mxu2 }
 0x572   :  { %v423_v0 = vadd.f32 %v422_v63, %v1476_v20 }
 0x574   :  { %v480_v10 = vadd.f32 %v471_v62, %v423_v0 }
 0x576   :  { %v511_v11 = vadd.f32 %v480_v10, %v1438_v9 }
 0x578   :  { %v512_v12 = vmax.f32 %v511_v11, 0.0  ;;  %v1654_v11 = vperm.slane %v1435_v8, 2 }
 0x57a   :  { %1124 = vmatmul.msk.f32.vlgmr.msrb.gmra.mxu2 %vm163_vm2, %v512_v12  ;;  %v222_v12 = vmul.f32 %v187_v19, %v1654_v11 }
 0x57b   :  { %1134 = vmatpush.msk.msrb.mxu2 %vm114_vm0, %v1402_v3 }
 0x59a   :  { %v476_v17 = vpop.permute.xlu1 %475 }
 0x59b   :  { %v478_v21 = vadd.f32 %v476_v17, %v394_v52  ;;  %v224_v17 = vsel %vm223_vm3, %v222_v12, 0.0 }
 0x59d   :  { %v1569_v22 = vadd.f32 %v478_v21, %v1485_v30  ;;  %v481_v21 = vmul.f32 %v450_v60, %v1654_v11 }
 0x59f   :  { %487 = vrot.lane.b32.xlu2 %v1569_v22, %s1332_s17 }
 0x5f9   :  { %v488_v23 = vpop.permute.xlu2 %487 }
 0x5fa   :  { %1123 = vmatmul.msk.f32.vlgmr.msrb.gmra.mxu1 %vm110_vm1, %v488_v23  ;;  %v482_v23 = vsel %vm223_vm3, %v481_v21, 0.0 }
 0x5fb   :  { %724 = vmatpush.msrb.mxu1 %v1429_v7 }
 0x5fd   :  { %v533_v24 = vpop.f32.mrf.mxu2  ;;  %725 = vmatpush.msrb.mxu1 %v1442_v13 }
 0x5fe   :  { %v1577_v25 = vadd.f32 %v533_v24, %v1462_v16 }
 0x5ff   :  { %726 = vmatpush.msrb.mxu1 %v1446_v14 }
 0x600   :  { %v536_v26 = vmax.f32 %v1577_v25, 0.0  ;;  %v309_v25 = vmul.f32 %v278_v34, %v1654_v11 }
 0x601   :  { %727 = vmatpush.msrb.mxu1 %v1451_v15 }
 0x602   :  { %1125 = vmatmul.msk.f32.vlgmr.msrb.gmra.mxu3 %vm163_vm2, %v536_v26  ;;  %v567_v24 = vmul.f32 %v536_v26, %v1654_v11  ;;  %v310_v26 = vsel %vm223_vm3, %v309_v25, 0.0 }
 0x603   :  { %786 = vmatpush.msrb.mxu3 %v1399_v2 }
 0x605   :  { %787 = vmatpush.msrb.mxu3 %v1415_v4 }
 0x607   :  { %788 = vmatpush.msrb.mxu3 %v1419_v5 }
 0x609   :  { %789 = vmatpush.msrb.mxu3 %v1424_v6 }
 0x677   :  { %v508_v27 = vpop.f32.mrf.mxu1 }
 0x678   :  { %v509_v28 = vadd.f32 %v508_v27, %v1476_v20  ;;  %v568_v27 = vsel %vm223_vm3, %v567_v24, 0.0 }
 0x685   :  { %v557_v29 = vpop.f32.mrf.mxu3 }
 0x686   :  { %v566_v32 = vadd.f32 %v557_v29, %v509_v28  ;;  %561 = vrot.lane.b32.xlu0 %v557_v29, %s1330_s2 }
 0x688   :  { %v597_v35 = vadd.f32 %v566_v32, %v1438_v9 }
 0x68a   :  { %v598_v36 = vmax.f32 %v597_v35, 0.0 }
 0x68c   :  { %1128 = vmatmul.msk.f32.vlgmr.msra.gmra.mxu1 %vm163_vm2, %v598_v36 }
 0x68d   :  { %1138 = vmatpush.msk.msra.mxu1 %vm114_vm0, %v1402_v3  ;;  %vm1043_vm0 = vcmask 359424  }
 0x6f8   :  { %v562_v37 = vpop.permute.xlu0 %561 }
 0x6f9   :  { %v564_v38 = vadd.f32 %v562_v37, %v480_v10 }
 0x6fb   :  { %v1596_v39 = vadd.f32 %v564_v38, %v1485_v30 }
 0x6fd   :  { %573 = vrot.lane.b32.xlu1 %v1596_v39, %s1332_s17 }
 0x709   :  { %v619_v40 = vpop.f32.mrf.mxu1 }
 0x70a   :  { %v1601_v41 = vadd.f32 %v619_v40, %v1462_v16 }
 0x70c   :  { %v622_v42 = vmax.f32 %v1601_v41, 0.0  ;;  %v1696_v41 = vperm.slane %v1435_v8, 5 }
 0x70e   :  { %1129 = vmatmul.msk.f32.vlgmr.msra.gmra.mxu2 %vm163_vm2, %v622_v42  ;;  %v653_v28 = vmul.f32 %v622_v42, %v1654_v11 }
 0x70f   :  { %872 = vmatpush.msra.mxu2 %v1399_v2 }
 0x711   :  { %873 = vmatpush.msra.mxu2 %v1415_v4 }
 0x713   :  { %874 = vmatpush.msra.mxu2 %v1419_v5 }
 0x715   :  { %875 = vmatpush.msra.mxu2 %v1424_v6 }
 0x76f   :  { %v574_v3 = vpop.permute.xlu1 %573 }
 0x770   :  { %1127 = vmatmul.msk.f32.vlgmr.msra.gmra.mxu0 %vm110_vm1, %v574_v3 }
 0x771   :  { %810 = vmatpush.msra.mxu0 %v1429_v7 }
 0x773   :  { %811 = vmatpush.msra.mxu0 %v1442_v13 }
 0x775   :  { %812 = vmatpush.msra.mxu0 %v1446_v14 }
 0x777   :  { %813 = vmatpush.msra.mxu0 %v1451_v15 }
 0x791   :  { %v643_v43 = vpop.f32.mrf.mxu2 }
 0x792   :  { %647 = vrot.lane.b32.xlu2 %v643_v43, %s1330_s2 }
 0x7ec   :  { %v648_v45 = vpop.permute.xlu2 %647 }
 0x7ed   :  { %v650_v46 = vadd.f32 %v648_v45, %v566_v32  ;;  %v594_v49 = vpop.f32.mrf.mxu0 }
 0x7ee   :  { %v595_v50 = vadd.f32 %v594_v49, %v1476_v20 }
 0x7ef   :  { %v651_v51 = vadd.f32 %v650_v46, %v1485_v30 }
 0x7f0   :  { %v652_v52 = vadd.f32 %v643_v43, %v595_v50 }
 0x7f1   :  { %659 = vrot.lane.b32.xlu0 %v651_v51, %s1332_s17 }
 0x7f2   :  { %v683_v53 = vadd.f32 %v652_v52, %v1438_v9 }
 0x7f4   :  { %v684_v54 = vmax.f32 %v683_v53, 0.0 }
 0x7f6   :  { %1132 = vmatmul.msk.f32.vlgmr.msrb.gmra.mxu0 %vm163_vm2, %v684_v54 }
 0x7f7   :  { %933 = vmatpush.msrb.mxu0 %v1399_v2 }
 0x7f9   :  { %934 = vmatpush.msrb.mxu0 %v1415_v4 }
 0x7fb   :  { %935 = vmatpush.msrb.mxu0 %v1419_v5 }
 0x7fd   :  { %936 = vmatpush.msrb.mxu0 %v1424_v6 }
 0x863   :  { %v660_v55 = vpop.permute.xlu0 %659 }
 0x864   :  { %1131 = vmatmul.msk.f32.vlgmr.msra.gmra.mxu3 %vm110_vm1, %v660_v55 }
 0x865   :  { %896 = vmatpush.msra.mxu3 %v1429_v7 }
 0x867   :  { %897 = vmatpush.msra.mxu3 %v1442_v13 }
 0x869   :  { %898 = vmatpush.msra.mxu3 %v1446_v14 }
 0x86b   :  { %899 = vmatpush.msra.mxu3 %v1451_v15 }
 0x873   :  { %v705_v56 = vpop.f32.mrf.mxu0 }
 0x874   :  { %v1632_v2 = vadd.f32 %v705_v56, %v1462_v16 }
 0x876   :  { %v708_v4 = vmax.f32 %v1632_v2, 0.0 }
 0x878   :  { %1133 = vmatmul.msk.f32.vlgmr.msrb.gmra.mxu1 %vm163_vm2, %v708_v4  ;;  %v739_v45 = vmul.f32 %v708_v4, %v1654_v11 }
 0x879   :  { %957 = vmatpush.msrb.mxu1 %v1429_v7 }
 0x87a   :  { %v740_v47 = vsel %vm223_vm3, %v739_v45, 0.0 }
 0x87b   :  { %958 = vmatpush.msrb.mxu1 %v1442_v13 }
 0x87d   :  { %959 = vmatpush.msrb.mxu1 %v1446_v14 }
 0x87f   :  { %960 = vmatpush.msrb.mxu1 %v1451_v15 }
 0x8e7   :  { %v680_v5 = vpop.f32.mrf.mxu3 }
 0x8e8   :  { %v681_v6 = vadd.f32 %v680_v5, %v1476_v20 }
 0x8f5   :  { %v729_v58 = vpop.f32.mrf.mxu1 }
 0x8f6   :  { %v738_v61 = vadd.f32 %v729_v58, %v681_v6  ;;  %733 = vrot.lane.b32.xlu1 %v729_v58, %s1330_s2 }
 0x8f8   :  { %v769_v62 = vadd.f32 %v738_v61, %v1438_v9 }
 0x8fa   :  { %v770_v63 = vmax.f32 %v769_v62, 0.0 }
 0x8fc   :  { %1136 = vmatmul.msk.f32.vlgmr.msrb.gmra.mxu3 %vm163_vm2, %v770_v63 }
 0x968   :  { %v734_v0 = vpop.permute.xlu1 %733 }
 0x969   :  { %v736_v7 = vadd.f32 %v734_v0, %v652_v52 }
 0x96b   :  { %v1647_v13 = vadd.f32 %v736_v7, %v1485_v30 }
 0x96d   :  { %745 = vrot.lane.b32.xlu2 %v1647_v13, %s1332_s17 }
 0x97f   :  { %v791_v14 = vpop.f32.mrf.mxu3 }
 0x980   :  { %v792_v15 = vadd.f32 %v791_v14, %v1462_v16 }
 0x982   :  { %v794_v10 = vmax.f32 %v792_v15, 0.0 }
 0x984   :  { %1137 = vmatmul.msk.f32.vlgmr.msra.gmra.mxu0 %vm163_vm2, %v794_v10  ;;  %v825_v18 = vmul.f32 %v794_v10, %v1654_v11 }
 0x986   :  { %v826_v19 = vsel %vm223_vm3, %v825_v18, 0.0 }
 0x996   :  { %225 = vadd.xlane.f32.xlu2 %v224_v17 }
 0x99e   :  { %483 = vadd.xlane.f32.xlu2 %v482_v23 }
 0x9a6   :  { %569 = vadd.xlane.f32.xlu2 %v568_v27 }
 0x9ae   :  { %827 = vadd.xlane.f32.xlu2 %v826_v19 }
 0x9c6   :  { %985 = vrot.lane.b32.xlu2 %v1569_v22, %s1333_s18  ;;  %v654_v22 = vsel %vm223_vm3, %v653_v28, 0.0 }
 0x9c7   :  { %v746_v59 = vpop.permute.xlu2 %745 }
 0x9c8   :  { %1135 = vmatmul.msk.f32.vlgmr.msrb.gmra.mxu2 %vm110_vm1, %v746_v59 }
 0x9ce   :  { %991 = vrot.lane.b32.xlu2 %v651_v51, %s1334_s19 }
 0xa01   :  { %v815_v60 = vpop.f32.mrf.mxu0 }
 0xa02   :  { %819 = vrot.lane.b32.xlu0 %v815_v60, %s1330_s2 }
 0xa09   :  { %v226_v38 = vpop.xlane.xlu2 %225 }
 0xa11   :  { %v484_v40 = vpop.xlane.xlu2 %483 }
 0xa12   :  { %v485_v50 = vadd.f32 %v484_v40, %v1696_v41 }
 0xa19   :  { %v570_v43 = vpop.xlane.xlu2 %569 }
 0xa1a   :  { %v571_v8 = vadd.f32 %v570_v43, %v1696_v41 }
 0xa21   :  { %v828_v6 = vpop.xlane.xlu2 %827 }
 0xa2c   :  { %311 = vadd.xlane.f32.xlu0 %v310_v26 }
 0xa34   :  { %655 = vadd.xlane.f32.xlu0 %v654_v22 }
 0xa48   :  { %979 = vrot.lane.b32.xlu0 %v1515_v44, %s1335_s20 }
 0xa4b   :  { %v766_v29 = vpop.f32.mrf.mxu2 }
 0xa4c   :  { %v767_v32 = vadd.f32 %v766_v29, %v1476_v20 }
 0xa4e   :  { %v1683_v35 = vadd.f32 %v815_v60, %v767_v32 }
 0xa50   :  { %v855_v33 = vadd.f32 %v1683_v35, %v1438_v9  ;;  %982 = vrot.lane.b32.xlu0 %v1542_v57, %s1336_s21  ;;  %v395_v57 = vmul.f32 %v364_v48, %v1654_v11  ;;  %v227_v48 = vadd.f32 %v226_v38, %v1696_v41 }
 0xa52   :  { %v856_v34 = vmax.f32 %v855_v33, 0.0  ;;  %v396_v3 = vsel %vm223_vm3, %v395_v57, 0.0 }
 0xa54   :  { %1140 = vmatmul.msk.f32.vlgmr.msra.gmra.mxu2 %vm163_vm2, %v856_v34 }
 0xa58   :  { %988 = vrot.lane.b32.xlu0 %v1596_v39, %s1337_s22 }
 0xa74   :  { %v820_v36 = vpop.permute.xlu0 %819 }
 0xa75   :  { %v822_v37 = vadd.f32 %v820_v36, %v738_v61  ;;  %v986_v61 = vpop.permute.xlu2 %985 }
 0xa77   :  { %v1691_v44 = vadd.f32 %v822_v37, %v1485_v30 }
 0xa79   :  { %831 = vrot.lane.b32.xlu1 %v1691_v44, %s1332_s17 }
 0xa7d   :  { %v992_v15 = vpop.permute.xlu2 %991 }
 0xa9f   :  { %v312_v42 = vpop.xlane.xlu0 %311 }
 0xaa0   :  { %v313_v39 = vadd.f32 %v312_v42, %v1696_v41 }
 0xaa2   :  { %1010 = vrot.lane.b32.xlu0 %v313_v39, %s1338_s23 }
 0xaa3   :  { %397 = vadd.xlane.f32.xlu1 %v396_v3 }
 0xaa7   :  { %v1719_v56 = vpop.xlane.xlu0 %655 }
 0xaaa   :  { %1022 = vrot.lane.b32.xlu0 %v571_v8, %s1339_s24 }
 0xaab   :  { %741 = vadd.xlane.f32.xlu1 %v740_v47 }
 0xaba   :  { %v980_v5 = vpop.permute.xlu0 %979 }
 0xac2   :  { %v983_v58 = vpop.permute.xlu0 %982 }
 0xac4   :  { %976 = vrot.lane.b32.xlu1 %v1488_v31, %s1340_s25 }
 0xacc   :  { %994 = vrot.lane.b32.xlu1 %v1647_v13, %s1330_s2  ;;  %v989_v13 = vpop.permute.xlu0 %988 }
 0xad4   :  { %1006 = vrot.lane.b32.xlu1 %v227_v48, %s1341_s26  ;;  %v657_v48 = vadd.f32 %v1719_v56, %v1696_v41 }
 0xad7   :  { %v877_v46 = vpop.f32.mrf.mxu2 }
 0xad8   :  { %v878_v49 = vadd.f32 %v877_v46, %v1462_v16 }
 0xada   :  { %v880_v51 = vmax.f32 %v878_v49, 0.0 }
 0xadc   :  { %1018 = vrot.lane.b32.xlu1 %v485_v50, %s1342_s27  ;;  %1141 = vmatmul.msk.f32.vlgmr.msra.gmra.mxu3 %vm163_vm2, %v880_v51  ;;  %v911_v31 = vmul.f32 %v880_v51, %v1654_v11 }
 0xade   :  { %v912_v53 = vsel %vm223_vm3, %v911_v31, 0.0 }
 0xaeb   :  { %v832_v52 = vpop.permute.xlu1 %831 }
 0xaec   :  { %1139 = vmatmul.msk.f32.vlgmr.msra.gmra.mxu1 %vm110_vm1, %v832_v52 }
 0xb06   :  { %913 = vadd.xlane.f32.xlu1 %v912_v53 }
 0xb14   :  { %v1011_v59 = vpop.permute.xlu0 %1010 }
 0xb16   :  { %v398_v54 = vpop.xlane.xlu1 %397 }
 0xb17   :  { %v399_v55 = vadd.f32 %v398_v54, %v1696_v41 }
 0xb19   :  { %1014 = vrot.lane.b32.xlu2 %v399_v55, %s1343_s28 }
 0xb1c   :  { %v1728_v25 = vpop.permute.xlu0 %1022 }
 0xb1e   :  { %v742_v2 = vpop.xlane.xlu1 %741 }
 0xb1f   :  { %v743_v4 = vadd.f32 %v742_v2, %v1696_v41 }
 0xb21   :  { %1054 = vrot.lane.b32.xlu2 %v743_v4, %s1344_s29 }
 0xb36   :  { %v977_v62 = vpop.permute.xlu1 %976 }
 0xb37   :  { %v1025_v63 = vsel %vm110_vm1, %v1397_v1, %v977_v62 }
 0xb38   :  { %v1027_v0 = vsel %vm1026_vm4, %v1025_v63, %v980_v5  ;;  %vm1049_vm4 = vcmask 384000  }
 0xb39   :  { %v1029_v7 = vsel %vm1028_vm5, %v1027_v0, %v983_v58  ;;  %vm1051_vm5 = vcmask 392192  }
 0xb3a   :  { %v1031_v14 = vsel %vm1030_vm6, %v1029_v7, %v986_v61  ;;  %vm1082_vm6 = vcmask 400384  }
 0xb3b   :  { %v1033_v10 = vsel %vm1032_vm7, %v1031_v14, %v989_v13 }
 0xb3c   :  { %v1035_v12 = vsel %vm1034_vm8, %v1033_v10, %v992_v15 }
 0xb3e   :  { %v995_v17 = vpop.permute.xlu1 %994 }
 0xb3f   :  { %v1037_v21 = vsel %vm1036_vm9, %v1035_v12, %v995_v17 }
 0xb40   :  { %v1038_v38 = vsel %vm163_vm2, %v1037_v21, %v1691_v44 }
 0xb46   :  { %v1007_v60 = vpop.permute.xlu1 %1006 }
 0xb4e   :  { %v1019_v26 = vpop.permute.xlu1 %1018 }
 0xb5f   :  { %v901_v23 = vpop.f32.mrf.mxu3 }
 0xb60   :  { %905 = vrot.lane.b32.xlu0 %v901_v23, %s1330_s2 }
 0xb69   :  { %v852_v24 = vpop.f32.mrf.mxu1 }
 0xb6a   :  { %v853_v27 = vadd.f32 %v852_v24, %v1476_v20 }
 0xb6c   :  { %v910_v1 = vadd.f32 %v901_v23, %v853_v27 }
 0xb6e   :  { %v916_v18 = vadd.f32 %v910_v1, %v1438_v9 }
 0xb70   :  { %v917_v19 = vmax.f32 %v916_v18, 0.0 }
 0xb72   :  { %1142 = vmatmul.msk.f32.vlgmr.msrb.gmra.mxu0 %vm163_vm2, %v917_v19 }
 0xb79   :  { %v914_v32 = vpop.xlane.xlu1 %913 }
 0xb7a   :  { %v915_v20 = vadd.f32 %v914_v32, %v1696_v41 }
 0xbd2   :  { %v906_v28 = vpop.permute.xlu0 %905 }
 0xbd3   :  { %v908_v22 = vadd.f32 %v906_v28, %v1683_v35  ;;  %v829_v35 = vadd.f32 %v828_v6, %v1696_v41 }
 0xbd5   :  { %v909_v29 = vadd.f32 %v908_v22, %v1485_v30 }
 0xbd7   :  { %998 = vrot.lane.b32.xlu0 %v909_v29, %s1345_s30 }
 0xbdf   :  { %1062 = vrot.lane.b32.xlu0 %v915_v20, %s1346_s1 }
 0xbef   :  { %v938_v9 = vpop.f32.mrf.mxu0 }
 0xbf0   :  { %v939_v33 = vadd.f32 %v938_v9, %v1462_v16  ;;  %v1015_v16 = vpop.permute.xlu2 %1014 }
 0xbf2   :  { %v941_v34 = vmax.f32 %v939_v33, 0.0 }
 0xbf4   :  { %1143 = vmatmul.msk.f32.vlgmr.msrb.gmra.mxu1 %vm163_vm2, %v941_v34  ;;  %v971_v36 = vmul.f32 %v941_v34, %v1654_v11  ;;  %vm1045_vm2 = vcmask 367616  }
 0xbf6   :  { %v972_v37 = vsel %vm223_vm3, %v971_v36, 0.0  ;;  %vm1047_vm3 = vcmask 375808  }
 0xbf7   :  { %973 = vadd.xlane.f32.xlu1 %v972_v37 }
 0xbf8   :  { %v1055_v39 = vpop.permute.xlu2 %1054 }
 0xbf9   :  { %v1070_v49 = vsel %vm1069_vm12, %v657_v48, %v1055_v39 }
 0xc10   :  { %1058 = vrot.lane.b32.xlu1 %v829_v35, %s1347_s7 }
 0xc49   :  { %v999_v40 = vpop.permute.xlu0 %998 }
 0xc4a   :  { %v1040_v57 = vsel %vm1039_vm10, %v1038_v38, %v999_v40 }
 0xc51   :  { %v1063_v51 = vpop.permute.xlu0 %1062 }
 0xc6a   :  { %v974_v45 = vpop.xlane.xlu1 %973 }
 0xc6b   :  { %v975_v8 = vadd.f32 %v974_v45, %v1696_v41 }
 0xc71   :  { %v962_v42 = vpop.f32.mrf.mxu1 }
 0xc72   :  { %966 = vrot.lane.b32.xlu2 %v962_v42, %s1330_s2 }
 0xc82   :  { %v1059_v46 = vpop.permute.xlu1 %1058 }
 0xc83   :  { %v1072_v50 = vsel %vm1071_vm13, %v1070_v49, %v1059_v46 }
 0xccc   :  { %v967_v3 = vpop.permute.xlu2 %966 }
 0xccd   :  { %v969_v11 = vadd.f32 %v967_v3, %v910_v1 }
 0xccf   :  { %v970_v43 = vadd.f32 %v969_v11, %v1485_v30  ;;  %v1074_v30 = vsel %vm1073_vm14, %v1072_v50, %v1063_v51 }
 0xcd1   :  { %1002 = vrot.lane.b32.xlu2 %v970_v43, %s1326_s6  ;;  %s1348_s6 = smov 49  }
 0xcd9   :  { %1066 = vrot.lane.b32.xlu2 %v975_v8, %s1345_s30 }
 0xd2b   :  { %v1003_v47 = vpop.permute.xlu2 %1002 }
 0xd2c   :  { %v1042_v44 = vsel %vm1041_vm11, %v1040_v57, %v1003_v47 }
 0xd2d   :  { %v1044_v54 = vsel %vm1043_vm0, %v1042_v44, %v1007_v60 }
 0xd2e   :  { %v1046_v55 = vsel %vm1045_vm2, %v1044_v54, %v1011_v59 }
 0xd2f   :  { %v1048_v41 = vsel %vm1047_vm3, %v1046_v55, %v1015_v16 }
 0xd30   :  { %v1050_v56 = vsel %vm1049_vm4, %v1048_v41, %v1019_v26 }
 0xd31   :  { %v1052_v2 = vsel %vm1051_vm5, %v1050_v56, %v1728_v25 }
 0xd33   :  { %v1067_v52 = vpop.permute.xlu2 %1066 }
 0xd34   :  { %v1075_v31 = vsel %vm110_vm1, %v1074_v30, %v1067_v52 }
 0xd35   :  { %v1077_v53 = vsel %vm1076_vm15, %v1075_v31, 0.0 }
 0xd36   :  { %1079 = vrot.lane.b32.xlu1 %v1077_v53, %s1348_s6 }
 0xda8   :  { %v1080_v4 = vpop.permute.xlu1 %1079 }
 0xda9   :  { %v1083_v5 = vsel %vm1082_vm6, %v1052_v2, %v1080_v4 }
 0xdaa   :  { %1084 = vst [vmem:[#allocation11] sm:$0x3] %v1083_v5 }
 0xdab   :  { %1095 = dma.vmem_to_hbm [thread:$0]  %s1091_s9, 32, %s1093_s3, [#allocation4]  }
 0xdac   :  { %1321 = dma.done.wait [#allocation4], 32  }
 0xdad   :  { %1322 = vsyncadd [#allocation4], 4294967264 }
 0xdae   :  { %1100 = vsyncpa [#allocation3], 1 }
 0xdaf   :  { %1101 = vsyncpa [#allocation6], 1 }
 0xdb0   :  { %1102 = vsyncpa [#allocation9], 1 }
 0xdb1   :  { %1103 = vsyncpa [#allocation4], 1 }

</bundles_post_ra>
